<compile_context>
chip_gen: v5e
topology: v5e:2x2
jax: 0.10.0
libtpu: 0.0.40
codegen_flags: <defaults>
</compile_context>

<pallas_src>
import numpy as np
import jax
import jax.numpy as jnp
from jax import lax
from jax.experimental import pallas as pl
from jax.experimental.pallas import tpu as pltpu

N = 2                 # batch (kernel layout below assumes N == 2)
H = W = 16            # input spatial (required by view(-1, 8*8*8))
C = 8                 # conv channels
PH = PW = 8           # pooled spatial
FEAT = C * PH * PW    # 512
OUT_DIM = 256         # decode view(-1, 16, 16) => output_dim = 256
EPS = 1e-5            # BatchNorm2d eps


# ----------------------------- Pallas kernel -----------------------------

def _fused_kernel(pm_ref, wblk_ref, gb_ref, w1_ref, wmid_ref, w6_ref, bias_ref,
                  out_ref, flat_ref):
    """Fused conv+relu+pool+bn+flatten+dense forward.

    pm_ref   : (19, 256)  im2col patches, rows = n*9+tap (row 18 = 1.0),
                          lanes = p*64 + (i*8+j) with p = pool-window position
    wblk_ref : (16, 19)   block-diagonal conv weight, rows = n*8+c, bias in col 18
    gb_ref   : (8, 2)     per-channel [gamma, beta]
    w1_ref   : (512, 128) dense 1
    wmid_ref : (128, 512) dense 2..5 side by side, zero-padded to 128x128 each
    w6_ref   : (128, 256) dense 6
    bias_ref : (6, 256)   dense biases, zero-padded
    out_ref  : (2, 256)
    flat_ref : (2, 512)   VMEM scratch used to realize the (C,H,W)-major flatten
    """
    # conv2d_1 (bias folded into the matmul via the ones-row) + ReLU
    conv = jnp.dot(wblk_ref[...], pm_ref[...],
                   preferred_element_type=jnp.float32)          # (16, 256)
    conv = jnp.maximum(conv, 0.0)

    # MaxPool2d(2): max over the 4 pool-window slabs (64-lane blocks)
    pooled = jnp.maximum(jnp.maximum(conv[:, 0:64], conv[:, 64:128]),
                         jnp.maximum(conv[:, 128:192], conv[:, 192:256]))  # (16, 64)

    # rows = n*8 + c, lanes = i*8 + j
    top = pooled[0:8, :]       # sample n=0, one row per channel
    bot = pooled[8:16, :]      # sample n=1

    # BatchNorm2d, training-mode batch statistics (biased variance), per channel
    # over (N, H, W) = the 2 rows x 64 lanes of each channel.
    # TODO(synk): running_mean/running_var update (training side effect) is not tracked.
    inv_cnt = 1.0 / float(N * PH * PW)
    mean = (jnp.sum(top, axis=1, keepdims=True)
            + jnp.sum(bot, axis=1, keepdims=True)) * inv_cnt     # (8, 1)
    ct = top - mean
    cb = bot - mean
    var = (jnp.sum(ct * ct, axis=1, keepdims=True)
           + jnp.sum(cb * cb, axis=1, keepdims=True)) * inv_cnt  # (8, 1)
    scale = lax.rsqrt(var + EPS) * gb_ref[:, 0:1]                # gamma / sqrt(var+eps)
    bn_top = ct * scale + gb_ref[:, 1:2]                         # (8, 64)
    bn_bot = cb * scale + gb_ref[:, 1:2]

    # x.view(-1, 8*8*8): flat[n, c*64 + i*8 + j] -- realized through VMEM scratch
    # with static sub-vreg stores (no in-register transpose needed).
    for c in range(C):
        flat_ref[0:1, c * 64:(c + 1) * 64] = bn_top[c:c + 1, :]
        flat_ref[1:2, c * 64:(c + 1) * 64] = bn_bot[c:c + 1, :]
    h = flat_ref[...]                                            # (2, 512)

    # encode_dense (512->128->64->32) + decode_dense (32->64->128->256),
    # ReLU after every Linear; narrow layers zero-padded to 128 (exact).
    h = jnp.maximum(jnp.dot(h, w1_ref[...], preferred_element_type=jnp.float32)
                    + bias_ref[0:1, 0:128], 0.0)                 # (2, 128)
    for l in range(4):
        w = wmid_ref[:, l * 128:(l + 1) * 128]                   # (128, 128)
        h = jnp.maximum(jnp.dot(h, w, preferred_element_type=jnp.float32)
                        + bias_ref[l + 1:l + 2, 0:128], 0.0)     # (2, 128)
    out_ref[...] = jnp.maximum(
        jnp.dot(h, w6_ref[...], preferred_element_type=jnp.float32)
        + bias_ref[5:6, :], 0.0)                                 # (2, 256)


def _fs(shape):
    # one grid step, block == whole array (exempt from the (8,128) divisibility rule)
    return pl.BlockSpec(shape, lambda i: (0,) * len(shape))


# ----------------------------- wrappers (glue) -----------------------------

def _build_patch_matrix(x):
    """x: (N, 16, 16) -> lane-dense im2col matrix (19, 256).

    pm[n*9 + (dh*3+dw), p*64 + (i*8+j)] = xpad[n, 2i+ph+dh, 2j+pw+dw],
    with p = ph*2 + pw (position inside the 2x2 pooling window).
    Row 18 is all ones (carries the conv bias through the matmul).
    """
    xpad = jnp.pad(x, ((0, 0), (1, 1), (1, 1)))                  # (N, 18, 18)
    taps = []
    for dh in range(3):
        for dw in range(3):
            pools = []
            for ph in range(2):
                for pw in range(2):
                    pools.append(xpad[:, ph + dh:ph + dh + 16:2,
                                         pw + dw:pw + dw + 16:2].reshape(N, 64))
            taps.append(jnp.stack(pools, axis=1))                # (N, 4, 64)
    pm = jnp.stack(taps, axis=1).reshape(N * 9, 4 * 64)          # (18, 256)
    return jnp.concatenate([pm, jnp.ones((1, 4 * 64), jnp.float32)], axis=0)


def pack_params(params):
    """One-time packing of the PyTorch-style parameters into kernel operands."""
    w9 = params["wc4"].reshape(C, 9)                             # (8, 9)
    bc = params["bc"].reshape(C, 1)
    z9 = jnp.zeros((C, 9), jnp.float32)
    wblk = jnp.concatenate([                                     # rows = n*8 + c
        jnp.concatenate([w9, z9, bc], axis=1),                   # n = 0 block
        jnp.concatenate([z9, w9, bc], axis=1)], axis=0)          # n = 1 block  -> (16, 19)
    gb = jnp.stack([params["gamma"], params["beta"]], axis=1)    # (8, 2)

    (w1, b1), (w2, b2), (w3, b3), (w4, b4), (w5, b5), (w6, b6) = params["dense"]

    def pad_w(w):
        return jnp.zeros((128, 128), jnp.float32).at[:w.shape[0], :w.shape[1]].set(w)

    def pad_b(b):
        return jnp.zeros((256,), jnp.float32).at[:b.shape[0]].set(b)

    wmid = jnp.concatenate([pad_w(w2), pad_w(w3), pad_w(w4), pad_w(w5)], axis=1)  # (128, 512)
    bias = jnp.stack([pad_b(b1), pad_b(b2), pad_b(b3),
                      pad_b(b4), pad_b(b5), pad_b(b6)], axis=0)                   # (6, 256)
    return dict(wblk=wblk, gb=gb, w1=w1, wmid=wmid, w6=w6, bias=bias)


def autoencoder_forward(x, packed):
    pm = _build_patch_matrix(x)
    out = pl.pallas_call(
        _fused_kernel,
        grid=(1,),
        in_specs=[_fs((N * 9 + 1, 256)), _fs((2 * C, N * 9 + 1)), _fs((C, 2)),
                  _fs((FEAT, 128)), _fs((128, 512)), _fs((128, OUT_DIM)),
                  _fs((6, OUT_DIM))],
        out_specs=_fs((N, OUT_DIM)),
        out_shape=jax.ShapeDtypeStruct((N, OUT_DIM), jnp.float32),
        scratch_shapes=[pltpu.VMEM((N, FEAT), jnp.float32)],
    )(pm, packed["wblk"], packed["gb"], packed["w1"], packed["wmid"],
      packed["w6"], packed["bias"])
    return out.reshape(N, 16, 16)                                # decode view(-1, 16, 16)


# --------------------------- parameters / reference ---------------------------

def init_params(key):
    ks = jax.random.split(key, 10)
    wc4 = jax.random.uniform(ks[0], (C, 1, 3, 3), jnp.float32, -1.0 / 3, 1.0 / 3)
    bc = jax.random.uniform(ks[1], (C,), jnp.float32, -1.0 / 3, 1.0 / 3)
    gamma = 1.0 + 0.1 * jax.random.normal(ks[2], (C,), dtype=jnp.float32)
    beta = 0.1 * jax.random.normal(ks[3], (C,), dtype=jnp.float32)
    dims = [(FEAT, 128), (128, 64), (64, 32), (32, 64), (64, 128), (128, OUT_DIM)]
    dense = []
    for i, (fi, fo) in enumerate(dims):
        kw, kb = jax.random.split(ks[4 + i])
        lim = 1.0 / np.sqrt(fi)
        w = jax.random.uniform(kw, (fi, fo), jnp.float32, -lim, lim)
        b = jax.random.uniform(kb, (fo,), jnp.float32, -lim, lim)
        dense.append((w, b))
    return dict(wc4=wc4, bc=bc, gamma=gamma, beta=beta, dense=dense)


def reference_forward(x, params):
    """Pure-JAX reference with PyTorch semantics (NCHW, unpadded weights)."""
    y = lax.conv_general_dilated(x[:, None], params["wc4"], (1, 1), ((1, 1), (1, 1)),
                                 dimension_numbers=("NCHW", "OIHW", "NCHW"),
                                 precision=lax.Precision.HIGHEST)
    y = jnp.maximum(y + params["bc"].reshape(1, C, 1, 1), 0.0)
    y = y.reshape(N, C, PH, 2, PW, 2).max(axis=(3, 5))
    mean = y.mean(axis=(0, 2, 3), keepdims=True)
    var = ((y - mean) ** 2).mean(axis=(0, 2, 3), keepdims=True)
    y = (y - mean) * lax.rsqrt(var + EPS) * params["gamma"].reshape(1, C, 1, 1) \
        + params["beta"].reshape(1, C, 1, 1)
    h = y.reshape(N, FEAT)
    for w, b in params["dense"]:
        h = jnp.maximum(jnp.matmul(h, w, precision=lax.Precision.HIGHEST) + b, 0.0)
    return h.reshape(N, 16, 16)


if __name__ == "__main__":
    key = jax.random.PRNGKey(0)
    kx, kp = jax.random.split(key)
    x = jax.random.normal(kx, (N, H, W), dtype=jnp.float32)
    params = init_params(kp)
    packed = pack_params(params)

    # Zero-padding invariants that make the padded dense layers exact.
    bias_np = np.asarray(packed["bias"])
    wmid_np = np.asarray(packed["wmid"])
    assert np.all(bias_np[1, 64:] == 0) and np.all(bias_np[2, 32:] == 0) \
        and np.all(bias_np[3, 64:] == 0)
    assert np.all(wmid_np[64:, 128:256] == 0)   # W3 padded input rows
    assert np.all(wmid_np[32:, 256:384] == 0)   # W4 padded input rows
    assert np.all(wmid_np[64:, 384:512] == 0)   # W5 padded input rows

    fwd = jax.jit(autoencoder_forward)
    out = jax.block_until_ready(fwd(x, packed))
    assert out.shape == (N, 16, 16) and out.dtype == jnp.float32

    ref = jax.block_until_ready(reference_forward(x, params))
    np.testing.assert_allclose(np.asarray(out), np.asarray(ref), rtol=1e-2, atol=1e-2)

    print("KERNEL_OK")
</pallas_src>

<mosaic_0001>
module attributes {stable_mosaic.version = 11 : i64} {
  func.func @_fused_kernel(%arg0: i32, %arg1: memref<19x256xf32, #tpu.memory_space<vmem>>, %arg2: memref<16x19xf32, #tpu.memory_space<vmem>>, %arg3: memref<8x2xf32, #tpu.memory_space<vmem>>, %arg4: memref<512x128xf32, #tpu.memory_space<vmem>>, %arg5: memref<128x512xf32, #tpu.memory_space<vmem>>, %arg6: memref<128x256xf32, #tpu.memory_space<vmem>>, %arg7: memref<6x256xf32, #tpu.memory_space<vmem>>, %arg8: memref<2x256xf32, #tpu.memory_space<vmem>>, %arg9: memref<2x512xf32, #tpu.memory_space<vmem>>) attributes {dimension_semantics = [#tpu.dimension_semantics<arbitrary>], iteration_bounds = array<i64: 1>, scalar_prefetch = 0 : i64, scratch_operands = 1 : i64, tpu.core_type = #tpu.core_type<tc>, window_params = [{pipeline_mode = #tpu.pipeline_mode<synchronous>, transform_indices = @transform_0, window_bounds = array<i64: 19, 256>}, {pipeline_mode = #tpu.pipeline_mode<synchronous>, transform_indices = @transform_1, window_bounds = array<i64: 16, 19>}, {pipeline_mode = #tpu.pipeline_mode<synchronous>, transform_indices = @transform_2, window_bounds = array<i64: 8, 2>}, {pipeline_mode = #tpu.pipeline_mode<synchronous>, transform_indices = @transform_3, window_bounds = array<i64: 512, 128>}, {pipeline_mode = #tpu.pipeline_mode<synchronous>, transform_indices = @transform_4, window_bounds = array<i64: 128, 512>}, {pipeline_mode = #tpu.pipeline_mode<synchronous>, transform_indices = @transform_5, window_bounds = array<i64: 128, 256>}, {pipeline_mode = #tpu.pipeline_mode<synchronous>, transform_indices = @transform_6, window_bounds = array<i64: 6, 256>}, {pipeline_mode = #tpu.pipeline_mode<synchronous>, transform_indices = @transform_7, window_bounds = array<i64: 2, 256>}]} {
    %c0 = arith.constant 0 : index
    %c0_0 = arith.constant 0 : index
    %0 = vector.load %arg2[%c0, %c0_0] : memref<16x19xf32, #tpu.memory_space<vmem>>, vector<16x19xf32>
    %c0_1 = arith.constant 0 : index
    %c0_2 = arith.constant 0 : index
    %1 = vector.load %arg1[%c0_1, %c0_2] : memref<19x256xf32, #tpu.memory_space<vmem>>, vector<19x256xf32>
    %cst = arith.constant dense<0.000000e+00> : vector<16x256xf32>
    %2 = tpu.matmul %0, %1, %cst {dimension_numbers = #tpu.dot_dimension_numbers<[1], [0], [0], [1], [0, 0, 1, 1], [], []>} : vector<16x19xf32>, vector<19x256xf32>, vector<16x256xf32> -> vector<16x256xf32>
    %cst_3 = arith.constant 0.000000e+00 : f32
    %3 = vector.broadcast %cst_3 : f32 to vector<16x256xf32>
    %4 = arith.maximumf %2, %3 : vector<16x256xf32>
    %5 = vector.extract_strided_slice %4 {offsets = [0, 0], sizes = [16, 64], strides = [1, 1]} : vector<16x256xf32> to vector<16x64xf32>
    %6 = vector.extract_strided_slice %4 {offsets = [0, 64], sizes = [16, 64], strides = [1, 1]} : vector<16x256xf32> to vector<16x64xf32>
    %7 = arith.maximumf %5, %6 : vector<16x64xf32>
    %8 = vector.extract_strided_slice %4 {offsets = [0, 128], sizes = [16, 64], strides = [1, 1]} : vector<16x256xf32> to vector<16x64xf32>
    %9 = vector.extract_strided_slice %4 {offsets = [0, 192], sizes = [16, 64], strides = [1, 1]} : vector<16x256xf32> to vector<16x64xf32>
    %10 = arith.maximumf %8, %9 : vector<16x64xf32>
    %11 = arith.maximumf %7, %10 : vector<16x64xf32>
    %12 = vector.extract_strided_slice %11 {offsets = [0, 0], sizes = [8, 64], strides = [1, 1]} : vector<16x64xf32> to vector<8x64xf32>
    %13 = vector.extract_strided_slice %11 {offsets = [8, 0], sizes = [8, 64], strides = [1, 1]} : vector<16x64xf32> to vector<8x64xf32>
    %cst_4 = arith.constant dense<0.000000e+00> : vector<8xf32>
    %14 = vector.multi_reduction <add>, %12, %cst_4 [1] : vector<8x64xf32> to vector<8xf32>
    %15 = vector.shape_cast %14 : vector<8xf32> to vector<8x1xf32>
    %cst_5 = arith.constant dense<0.000000e+00> : vector<8xf32>
    %16 = vector.multi_reduction <add>, %13, %cst_5 [1] : vector<8x64xf32> to vector<8xf32>
    %17 = vector.shape_cast %16 : vector<8xf32> to vector<8x1xf32>
    %18 = arith.addf %15, %17 : vector<8x1xf32>
    %cst_6 = arith.constant 7.812500e-03 : f32
    %19 = vector.broadcast %cst_6 : f32 to vector<8x1xf32>
    %20 = arith.mulf %18, %19 : vector<8x1xf32>
    %21 = vector.broadcast %20 : vector<8x1xf32> to vector<8x64xf32>
    %22 = arith.subf %12, %21 : vector<8x64xf32>
    %23 = vector.broadcast %20 : vector<8x1xf32> to vector<8x64xf32>
    %24 = arith.subf %13, %23 : vector<8x64xf32>
    %25 = arith.mulf %22, %22 : vector<8x64xf32>
    %cst_7 = arith.constant dense<0.000000e+00> : vector<8xf32>
    %26 = vector.multi_reduction <add>, %25, %cst_7 [1] : vector<8x64xf32> to vector<8xf32>
    %27 = vector.shape_cast %26 : vector<8xf32> to vector<8x1xf32>
    %28 = arith.mulf %24, %24 : vector<8x64xf32>
    %cst_8 = arith.constant dense<0.000000e+00> : vector<8xf32>
    %29 = vector.multi_reduction <add>, %28, %cst_8 [1] : vector<8x64xf32> to vector<8xf32>
    %30 = vector.shape_cast %29 : vector<8xf32> to vector<8x1xf32>
    %31 = arith.addf %27, %30 : vector<8x1xf32>
    %cst_9 = arith.constant 7.812500e-03 : f32
    %32 = vector.broadcast %cst_9 : f32 to vector<8x1xf32>
    %33 = arith.mulf %31, %32 : vector<8x1xf32>
    %cst_10 = arith.constant 9.99999974E-6 : f32
    %34 = vector.broadcast %cst_10 : f32 to vector<8x1xf32>
    %35 = arith.addf %33, %34 : vector<8x1xf32>
    %36 = math.rsqrt %35 : vector<8x1xf32>
    %c0_11 = arith.constant 0 : index
    %c0_12 = arith.constant 0 : index
    %37 = vector.load %arg3[%c0_11, %c0_12] : memref<8x2xf32, #tpu.memory_space<vmem>>, vector<8x1xf32>
    %38 = arith.mulf %36, %37 : vector<8x1xf32>
    %39 = vector.broadcast %38 : vector<8x1xf32> to vector<8x64xf32>
    %40 = arith.mulf %22, %39 : vector<8x64xf32>
    %c0_13 = arith.constant 0 : index
    %c1 = arith.constant 1 : index
    %41 = vector.load %arg3[%c0_13, %c1] : memref<8x2xf32, #tpu.memory_space<vmem>>, vector<8x1xf32>
    %42 = vector.broadcast %41 : vector<8x1xf32> to vector<8x64xf32>
    %43 = arith.addf %40, %42 : vector<8x64xf32>
    %44 = vector.broadcast %38 : vector<8x1xf32> to vector<8x64xf32>
    %45 = arith.mulf %24, %44 : vector<8x64xf32>
    %c0_14 = arith.constant 0 : index
    %c1_15 = arith.constant 1 : index
    %46 = vector.load %arg3[%c0_14, %c1_15] : memref<8x2xf32, #tpu.memory_space<vmem>>, vector<8x1xf32>
    %47 = vector.broadcast %46 : vector<8x1xf32> to vector<8x64xf32>
    %48 = arith.addf %45, %47 : vector<8x64xf32>
    %49 = vector.extract_strided_slice %43 {offsets = [0, 0], sizes = [1, 64], strides = [1, 1]} : vector<8x64xf32> to vector<1x64xf32>
    %c0_16 = arith.constant 0 : index
    %c0_17 = arith.constant 0 : index
    %50 = vector.load %arg9[%c0_16, %c0_17] : memref<2x512xf32, #tpu.memory_space<vmem>>, vector<1x64xf32>
    tpu.vector_store %arg9[%c0_16, %c0_17], %49 {strides = array<i32>} : memref<2x512xf32, #tpu.memory_space<vmem>>, vector<1x64xf32>,
    %51 = vector.extract_strided_slice %48 {offsets = [0, 0], sizes = [1, 64], strides = [1, 1]} : vector<8x64xf32> to vector<1x64xf32>
    %c1_18 = arith.constant 1 : index
    %c0_19 = arith.constant 0 : index
    %52 = vector.load %arg9[%c1_18, %c0_19] : memref<2x512xf32, #tpu.memory_space<vmem>>, vector<1x64xf32>
    tpu.vector_store %arg9[%c1_18, %c0_19], %51 {strides = array<i32>} : memref<2x512xf32, #tpu.memory_space<vmem>>, vector<1x64xf32>,
    %53 = vector.extract_strided_slice %43 {offsets = [1, 0], sizes = [1, 64], strides = [1, 1]} : vector<8x64xf32> to vector<1x64xf32>
    %c0_20 = arith.constant 0 : index
    %c64 = arith.constant 64 : index
    %54 = vector.load %arg9[%c0_20, %c64] : memref<2x512xf32, #tpu.memory_space<vmem>>, vector<1x64xf32>
    tpu.vector_store %arg9[%c0_20, %c64], %53 {strides = array<i32>} : memref<2x512xf32, #tpu.memory_space<vmem>>, vector<1x64xf32>,
    %55 = vector.extract_strided_slice %48 {offsets = [1, 0], sizes = [1, 64], strides = [1, 1]} : vector<8x64xf32> to vector<1x64xf32>
    %c1_21 = arith.constant 1 : index
    %c64_22 = arith.constant 64 : index
    %56 = vector.load %arg9[%c1_21, %c64_22] : memref<2x512xf32, #tpu.memory_space<vmem>>, vector<1x64xf32>
    tpu.vector_store %arg9[%c1_21, %c64_22], %55 {strides = array<i32>} : memref<2x512xf32, #tpu.memory_space<vmem>>, vector<1x64xf32>,
    %57 = vector.extract_strided_slice %43 {offsets = [2, 0], sizes = [1, 64], strides = [1, 1]} : vector<8x64xf32> to vector<1x64xf32>
    %c0_23 = arith.constant 0 : index
    %c128 = arith.constant 128 : index
    %58 = vector.load %arg9[%c0_23, %c128] : memref<2x512xf32, #tpu.memory_space<vmem>>, vector<1x64xf32>
    tpu.vector_store %arg9[%c0_23, %c128], %57 {strides = array<i32>} : memref<2x512xf32, #tpu.memory_space<vmem>>, vector<1x64xf32>,
    %59 = vector.extract_strided_slice %48 {offsets = [2, 0], sizes = [1, 64], strides = [1, 1]} : vector<8x64xf32> to vector<1x64xf32>
    %c1_24 = arith.constant 1 : index
    %c128_25 = arith.constant 128 : index
    %60 = vector.load %arg9[%c1_24, %c128_25] : memref<2x512xf32, #tpu.memory_space<vmem>>, vector<1x64xf32>
    tpu.vector_store %arg9[%c1_24, %c128_25], %59 {strides = array<i32>} : memref<2x512xf32, #tpu.memory_space<vmem>>, vector<1x64xf32>,
    %61 = vector.extract_strided_slice %43 {offsets = [3, 0], sizes = [1, 64], strides = [1, 1]} : vector<8x64xf32> to vector<1x64xf32>
    %c0_26 = arith.constant 0 : index
    %c192 = arith.constant 192 : index
    %62 = vector.load %arg9[%c0_26, %c192] : memref<2x512xf32, #tpu.memory_space<vmem>>, vector<1x64xf32>
    tpu.vector_store %arg9[%c0_26, %c192], %61 {strides = array<i32>} : memref<2x512xf32, #tpu.memory_space<vmem>>, vector<1x64xf32>,
    %63 = vector.extract_strided_slice %48 {offsets = [3, 0], sizes = [1, 64], strides = [1, 1]} : vector<8x64xf32> to vector<1x64xf32>
    %c1_27 = arith.constant 1 : index
    %c192_28 = arith.constant 192 : index
    %64 = vector.load %arg9[%c1_27, %c192_28] : memref<2x512xf32, #tpu.memory_space<vmem>>, vector<1x64xf32>
    tpu.vector_store %arg9[%c1_27, %c192_28], %63 {strides = array<i32>} : memref<2x512xf32, #tpu.memory_space<vmem>>, vector<1x64xf32>,
    %65 = vector.extract_strided_slice %43 {offsets = [4, 0], sizes = [1, 64], strides = [1, 1]} : vector<8x64xf32> to vector<1x64xf32>
    %c0_29 = arith.constant 0 : index
    %c256 = arith.constant 256 : index
    %66 = vector.load %arg9[%c0_29, %c256] : memref<2x512xf32, #tpu.memory_space<vmem>>, vector<1x64xf32>
    tpu.vector_store %arg9[%c0_29, %c256], %65 {strides = array<i32>} : memref<2x512xf32, #tpu.memory_space<vmem>>, vector<1x64xf32>,
    %67 = vector.extract_strided_slice %48 {offsets = [4, 0], sizes = [1, 64], strides = [1, 1]} : vector<8x64xf32> to vector<1x64xf32>
    %c1_30 = arith.constant 1 : index
    %c256_31 = arith.constant 256 : index
    %68 = vector.load %arg9[%c1_30, %c256_31] : memref<2x512xf32, #tpu.memory_space<vmem>>, vector<1x64xf32>
    tpu.vector_store %arg9[%c1_30, %c256_31], %67 {strides = array<i32>} : memref<2x512xf32, #tpu.memory_space<vmem>>, vector<1x64xf32>,
    %69 = vector.extract_strided_slice %43 {offsets = [5, 0], sizes = [1, 64], strides = [1, 1]} : vector<8x64xf32> to vector<1x64xf32>
    %c0_32 = arith.constant 0 : index
    %c320 = arith.constant 320 : index
    %70 = vector.load %arg9[%c0_32, %c320] : memref<2x512xf32, #tpu.memory_space<vmem>>, vector<1x64xf32>
    tpu.vector_store %arg9[%c0_32, %c320], %69 {strides = array<i32>} : memref<2x512xf32, #tpu.memory_space<vmem>>, vector<1x64xf32>,
    %71 = vector.extract_strided_slice %48 {offsets = [5, 0], sizes = [1, 64], strides = [1, 1]} : vector<8x64xf32> to vector<1x64xf32>
    %c1_33 = arith.constant 1 : index
    %c320_34 = arith.constant 320 : index
    %72 = vector.load %arg9[%c1_33, %c320_34] : memref<2x512xf32, #tpu.memory_space<vmem>>, vector<1x64xf32>
    tpu.vector_store %arg9[%c1_33, %c320_34], %71 {strides = array<i32>} : memref<2x512xf32, #tpu.memory_space<vmem>>, vector<1x64xf32>,
    %73 = vector.extract_strided_slice %43 {offsets = [6, 0], sizes = [1, 64], strides = [1, 1]} : vector<8x64xf32> to vector<1x64xf32>
    %c0_35 = arith.constant 0 : index
    %c384 = arith.constant 384 : index
    %74 = vector.load %arg9[%c0_35, %c384] : memref<2x512xf32, #tpu.memory_space<vmem>>, vector<1x64xf32>
    tpu.vector_store %arg9[%c0_35, %c384], %73 {strides = array<i32>} : memref<2x512xf32, #tpu.memory_space<vmem>>, vector<1x64xf32>,
    %75 = vector.extract_strided_slice %48 {offsets = [6, 0], sizes = [1, 64], strides = [1, 1]} : vector<8x64xf32> to vector<1x64xf32>
    %c1_36 = arith.constant 1 : index
    %c384_37 = arith.constant 384 : index
    %76 = vector.load %arg9[%c1_36, %c384_37] : memref<2x512xf32, #tpu.memory_space<vmem>>, vector<1x64xf32>
    tpu.vector_store %arg9[%c1_36, %c384_37], %75 {strides = array<i32>} : memref<2x512xf32, #tpu.memory_space<vmem>>, vector<1x64xf32>,
    %77 = vector.extract_strided_slice %43 {offsets = [7, 0], sizes = [1, 64], strides = [1, 1]} : vector<8x64xf32> to vector<1x64xf32>
    %c0_38 = arith.constant 0 : index
    %c448 = arith.constant 448 : index
    %78 = vector.load %arg9[%c0_38, %c448] : memref<2x512xf32, #tpu.memory_space<vmem>>, vector<1x64xf32>
    tpu.vector_store %arg9[%c0_38, %c448], %77 {strides = array<i32>} : memref<2x512xf32, #tpu.memory_space<vmem>>, vector<1x64xf32>,
    %79 = vector.extract_strided_slice %48 {offsets = [7, 0], sizes = [1, 64], strides = [1, 1]} : vector<8x64xf32> to vector<1x64xf32>
    %c1_39 = arith.constant 1 : index
    %c448_40 = arith.constant 448 : index
    %80 = vector.load %arg9[%c1_39, %c448_40] : memref<2x512xf32, #tpu.memory_space<vmem>>, vector<1x64xf32>
    tpu.vector_store %arg9[%c1_39, %c448_40], %79 {strides = array<i32>} : memref<2x512xf32, #tpu.memory_space<vmem>>, vector<1x64xf32>,
    %c0_41 = arith.constant 0 : index
    %c0_42 = arith.constant 0 : index
    %81 = vector.load %arg9[%c0_41, %c0_42] : memref<2x512xf32, #tpu.memory_space<vmem>>, vector<2x512xf32>
    %c0_43 = arith.constant 0 : index
    %c0_44 = arith.constant 0 : index
    %82 = vector.load %arg4[%c0_43, %c0_44] : memref<512x128xf32, #tpu.memory_space<vmem>>, vector<512x128xf32>
    %cst_45 = arith.constant dense<0.000000e+00> : vector<2x128xf32>
    %83 = tpu.matmul %81, %82, %cst_45 {dimension_numbers = #tpu.dot_dimension_numbers<[1], [0], [0], [1], [0, 0, 1, 1], [], []>} : vector<2x512xf32>, vector<512x128xf32>, vector<2x128xf32> -> vector<2x128xf32>
    %c0_46 = arith.constant 0 : index
    %c0_47 = arith.constant 0 : index
    %84 = vector.load %arg7[%c0_46, %c0_47] : memref<6x256xf32, #tpu.memory_space<vmem>>, vector<1x128xf32>
    %85 = vector.broadcast %84 : vector<1x128xf32> to vector<2x128xf32>
    %86 = arith.addf %83, %85 : vector<2x128xf32>
    %cst_48 = arith.constant 0.000000e+00 : f32
    %87 = vector.broadcast %cst_48 : f32 to vector<2x128xf32>
    %88 = arith.maximumf %86, %87 : vector<2x128xf32>
    %c0_49 = arith.constant 0 : index
    %c0_50 = arith.constant 0 : index
    %89 = vector.load %arg5[%c0_49, %c0_50] : memref<128x512xf32, #tpu.memory_space<vmem>>, vector<128x128xf32>
    %cst_51 = arith.constant dense<0.000000e+00> : vector<2x128xf32>
    %90 = tpu.matmul %88, %89, %cst_51 {dimension_numbers = #tpu.dot_dimension_numbers<[1], [0], [0], [1], [0, 0, 1, 1], [], []>} : vector<2x128xf32>, vector<128x128xf32>, vector<2x128xf32> -> vector<2x128xf32>
    %c1_52 = arith.constant 1 : index
    %c0_53 = arith.constant 0 : index
    %91 = vector.load %arg7[%c1_52, %c0_53] : memref<6x256xf32, #tpu.memory_space<vmem>>, vector<1x128xf32>
    %92 = vector.broadcast %91 : vector<1x128xf32> to vector<2x128xf32>
    %93 = arith.addf %90, %92 : vector<2x128xf32>
    %cst_54 = arith.constant 0.000000e+00 : f32
    %94 = vector.broadcast %cst_54 : f32 to vector<2x128xf32>
    %95 = arith.maximumf %93, %94 : vector<2x128xf32>
    %c0_55 = arith.constant 0 : index
    %c128_56 = arith.constant 128 : index
    %96 = vector.load %arg5[%c0_55, %c128_56] : memref<128x512xf32, #tpu.memory_space<vmem>>, vector<128x128xf32>
    %cst_57 = arith.constant dense<0.000000e+00> : vector<2x128xf32>
    %97 = tpu.matmul %95, %96, %cst_57 {dimension_numbers = #tpu.dot_dimension_numbers<[1], [0], [0], [1], [0, 0, 1, 1], [], []>} : vector<2x128xf32>, vector<128x128xf32>, vector<2x128xf32> -> vector<2x128xf32>
    %c2 = arith.constant 2 : index
    %c0_58 = arith.constant 0 : index
    %98 = vector.load %arg7[%c2, %c0_58] : memref<6x256xf32, #tpu.memory_space<vmem>>, vector<1x128xf32>
    %99 = vector.broadcast %98 : vector<1x128xf32> to vector<2x128xf32>
    %100 = arith.addf %97, %99 : vector<2x128xf32>
    %cst_59 = arith.constant 0.000000e+00 : f32
    %101 = vector.broadcast %cst_59 : f32 to vector<2x128xf32>
    %102 = arith.maximumf %100, %101 : vector<2x128xf32>
    %c0_60 = arith.constant 0 : index
    %c256_61 = arith.constant 256 : index
    %103 = vector.load %arg5[%c0_60, %c256_61] : memref<128x512xf32, #tpu.memory_space<vmem>>, vector<128x128xf32>
    %cst_62 = arith.constant dense<0.000000e+00> : vector<2x128xf32>
    %104 = tpu.matmul %102, %103, %cst_62 {dimension_numbers = #tpu.dot_dimension_numbers<[1], [0], [0], [1], [0, 0, 1, 1], [], []>} : vector<2x128xf32>, vector<128x128xf32>, vector<2x128xf32> -> vector<2x128xf32>
    %c3 = arith.constant 3 : index
    %c0_63 = arith.constant 0 : index
    %105 = vector.load %arg7[%c3, %c0_63] : memref<6x256xf32, #tpu.memory_space<vmem>>, vector<1x128xf32>
    %106 = vector.broadcast %105 : vector<1x128xf32> to vector<2x128xf32>
    %107 = arith.addf %104, %106 : vector<2x128xf32>
    %cst_64 = arith.constant 0.000000e+00 : f32
    %108 = vector.broadcast %cst_64 : f32 to vector<2x128xf32>
    %109 = arith.maximumf %107, %108 : vector<2x128xf32>
    %c0_65 = arith.constant 0 : index
    %c384_66 = arith.constant 384 : index
    %110 = vector.load %arg5[%c0_65, %c384_66] : memref<128x512xf32, #tpu.memory_space<vmem>>, vector<128x128xf32>
    %cst_67 = arith.constant dense<0.000000e+00> : vector<2x128xf32>
    %111 = tpu.matmul %109, %110, %cst_67 {dimension_numbers = #tpu.dot_dimension_numbers<[1], [0], [0], [1], [0, 0, 1, 1], [], []>} : vector<2x128xf32>, vector<128x128xf32>, vector<2x128xf32> -> vector<2x128xf32>
    %c4 = arith.constant 4 : index
    %c0_68 = arith.constant 0 : index
    %112 = vector.load %arg7[%c4, %c0_68] : memref<6x256xf32, #tpu.memory_space<vmem>>, vector<1x128xf32>
    %113 = vector.broadcast %112 : vector<1x128xf32> to vector<2x128xf32>
    %114 = arith.addf %111, %113 : vector<2x128xf32>
    %cst_69 = arith.constant 0.000000e+00 : f32
    %115 = vector.broadcast %cst_69 : f32 to vector<2x128xf32>
    %116 = arith.maximumf %114, %115 : vector<2x128xf32>
    %c0_70 = arith.constant 0 : index
    %c0_71 = arith.constant 0 : index
    %117 = vector.load %arg6[%c0_70, %c0_71] : memref<128x256xf32, #tpu.memory_space<vmem>>, vector<128x256xf32>
    %cst_72 = arith.constant dense<0.000000e+00> : vector<2x256xf32>
    %118 = tpu.matmul %116, %117, %cst_72 {dimension_numbers = #tpu.dot_dimension_numbers<[1], [0], [0], [1], [0, 0, 1, 1], [], []>} : vector<2x128xf32>, vector<128x256xf32>, vector<2x256xf32> -> vector<2x256xf32>
    %c5 = arith.constant 5 : index
    %c0_73 = arith.constant 0 : index
    %119 = vector.load %arg7[%c5, %c0_73] : memref<6x256xf32, #tpu.memory_space<vmem>>, vector<1x256xf32>
    %120 = vector.broadcast %119 : vector<1x256xf32> to vector<2x256xf32>
    %121 = arith.addf %118, %120 : vector<2x256xf32>
    %cst_74 = arith.constant 0.000000e+00 : f32
    %122 = vector.broadcast %cst_74 : f32 to vector<2x256xf32>
    %123 = arith.maximumf %121, %122 : vector<2x256xf32>
    %c0_75 = arith.constant 0 : index
    %c0_76 = arith.constant 0 : index
    %124 = vector.load %arg8[%c0_75, %c0_76] : memref<2x256xf32, #tpu.memory_space<vmem>>, vector<2x256xf32>
    tpu.vector_store %arg8[%c0_75, %c0_76], %123 {strides = array<i32>} : memref<2x256xf32, #tpu.memory_space<vmem>>, vector<2x256xf32>,
    return
  }
  func.func @transform_0(%arg0: i32) -> (i32, i32) {
    %c0_i32 = arith.constant 0 : i32
    %c0_i32_0 = arith.constant 0 : i32
    %c0_i32_1 = arith.constant 0 : i32
    return %c0_i32, %c0_i32_0 : i32, i32
  }
  func.func @transform_1(%arg0: i32) -> (i32, i32) {
    %c0_i32 = arith.constant 0 : i32
    %c0_i32_0 = arith.constant 0 : i32
    %c0_i32_1 = arith.constant 0 : i32
    return %c0_i32, %c0_i32_0 : i32, i32
  }
  func.func @transform_2(%arg0: i32) -> (i32, i32) {
    %c0_i32 = arith.constant 0 : i32
    %c0_i32_0 = arith.constant 0 : i32
    %c0_i32_1 = arith.constant 0 : i32
    return %c0_i32, %c0_i32_0 : i32, i32
  }
  func.func @transform_3(%arg0: i32) -> (i32, i32) {
    %c0_i32 = arith.constant 0 : i32
    %c0_i32_0 = arith.constant 0 : i32
    %c0_i32_1 = arith.constant 0 : i32
    return %c0_i32, %c0_i32_0 : i32, i32
  }
  func.func @transform_4(%arg0: i32) -> (i32, i32) {
    %c0_i32 = arith.constant 0 : i32
    %c0_i32_0 = arith.constant 0 : i32
    %c0_i32_1 = arith.constant 0 : i32
    return %c0_i32, %c0_i32_0 : i32, i32
  }
  func.func @transform_5(%arg0: i32) -> (i32, i32) {
    %c0_i32 = arith.constant 0 : i32
    %c0_i32_0 = arith.constant 0 : i32
    %c0_i32_1 = arith.constant 0 : i32
    return %c0_i32, %c0_i32_0 : i32, i32
  }
  func.func @transform_6(%arg0: i32) -> (i32, i32) {
    %c0_i32 = arith.constant 0 : i32
    %c0_i32_0 = arith.constant 0 : i32
    %c0_i32_1 = arith.constant 0 : i32
    return %c0_i32, %c0_i32_0 : i32, i32
  }
  func.func @transform_7(%arg0: i32) -> (i32, i32) {
    %c0_i32 = arith.constant 0 : i32
    %c0_i32_0 = arith.constant 0 : i32
    %c0_i32_1 = arith.constant 0 : i32
    return %c0_i32, %c0_i32_0 : i32, i32
  }
}

</mosaic_0001>

<bundles_post_ra>
// kernel: autoencoder_forward.1
= control target key start
LH: loop header
LB: loop body
LE: loop exit
PB: predicated region body
PF: predicated region fallthrough
CT: control target
= control target key end

     0   :  { %vm41_vm0 = vcmask 1042432   ;;  %vm34_vm1 = vcmask 154624   ;;  %vm120_vm2 = vcmask 523264   ;;  %v695_v38 = vmov 0   ;;  %s1297_s0 = inlined_call_operand.vmem [shape: f32[19,256], index: 0, kind: input, shape index: {}]   ;;  %s1298_s1 = inlined_call_operand.vmem [shape: f32[16,19], index: 1, kind: input, shape index: {}]   ;;  %s1299_s2 = inlined_call_operand.vmem [shape: f32[8,2], index: 2, kind: input, shape index: {}]   ;;  %s1300_s3 = inlined_call_operand.vmem [shape: f32[512,128], index: 3, kind: input, shape index: {}]   ;;  %s1301_s4 = inlined_call_operand.vmem [shape: f32[128,512], index: 4, kind: input, shape index: {}]   ;;  %s1302_s6 = inlined_call_operand.vmem [shape: f32[6,256], index: 6, kind: input, shape index: {}]   ;;  %s1303_s5 = inlined_call_operand.vmem [shape: f32[128,256], index: 5, kind: input, shape index: {}]   ;;  %s1304_s7 = inlined_call_operand.vmem [shape: f32[2,256], index: 7, kind: output, shape index: {}]  }
   0x1   :  { %v32_v0 = vld [vmem:[%s1297_s0 + $0x20] sm:$0x7]  ;;  %v33_v1 = vld [vmem:[%s1297_s0 + $0x28] sm:$0x7]  ;;  %v30_v2 = vld [vmem:[%s1297_s0 + $0x10] sm:$0xff]  ;;  %689 = vset.pattern.permute.xlu2 %v695_v38  ;;  %v696_v39 = vmov 1  }
   0x2   :  { %671 = vmatpush.msk.msra.mxu0 %vm41_vm0, %v32_v0  ;;  %674 = vmatpush.msk.msra.mxu1 %vm41_vm0, %v33_v1  ;;  %v31_v3 = vld [vmem:[%s1297_s0 + $0x18] sm:$0xff]  ;;  %v28_v4 = vld [vmem:[%s1297_s0] sm:$0xff]  ;;  %v29_v5 = vld [vmem:[%s1297_s0 + $0x8] sm:$0xff]  ;;  %s694_s0 = smov 64   ;;  %vm168_vm6 = vcmask 516096   ;;  %vm177_vm7 = vcmask 1040896  }
   0x3   :  { %v26_v6 = vld [vmem:[%s1298_s1] sm:$0xff]  ;;  %v27_v7 = vld [vmem:[%s1298_s1 + $0x8] sm:$0xff]  ;;  %691 = vset.pattern.permute.xlu0 %v696_v39  ;;  %v282_v38 = vld [vmem:[%s1300_s3 + $0x58] sm:$0xff]  ;;  %vm663_vm8 = vcmask 1041408  }
   0x4   :  { %62 = vmatpush.msra.mxu0 %v30_v2  ;;  %85 = vmatpush.msra.mxu1 %v31_v3  ;;  %v152_v51 = vld [vmem:[%s1299_s2] sm:$0xff] }
   0x6   :  { %63 = vmatpush.msra.mxu0 %v28_v4  ;;  %86 = vmatpush.msra.mxu1 %v29_v5 }
   0x7   :  { %672 = vmatmul.msk.f32.vlgmr.msra.gmra.mxu0 %vm34_vm1, %v26_v6  ;;  %675 = vmatmul.msk.f32.vlgmr.msra.gmra.mxu1 %vm34_vm1, %v26_v6 }
   0xf   :  { %673 = vmatmul.msk.f32.gmra.mxu0 %vm34_vm1, %v27_v7  ;;  %676 = vmatmul.msk.f32.gmra.mxu1 %vm34_vm1, %v27_v7 }
  0x84   :  { %v65_v8 = vpop.f32.mrf.mxu0  ;;  %v88_v9 = vpop.f32.mrf.mxu1 }
  0x85   :  { %v94_v10 = vmax.f32 %v65_v8, 0.0  ;;  %v95_v11 = vmax.f32 %v88_v9, 0.0 }
  0x87   :  { %110 = vrot.lane.b32.xlu1 %v95_v11, %s694_s0  ;;  %100 = vrot.lane.b32.xlu0 %v94_v10, %s694_s0 }
  0x8c   :  { %v68_v12 = vpop.f32.mrf.mxu0  ;;  %v91_v13 = vpop.f32.mrf.mxu1 }
  0x8d   :  { %v96_v14 = vmax.f32 %v68_v12, 0.0  ;;  %v97_v15 = vmax.f32 %v91_v13, 0.0 }
  0x8f   :  { %112 = vrot.lane.b32.xlu1 %v97_v15, %s694_s0  ;;  %102 = vrot.lane.b32.xlu0 %v96_v14, %s694_s0 }
  0xf9   :  { %v111_v16 = vpop.permute.xlu1 %110  ;;  %v101_v17 = vpop.permute.xlu0 %100 }
  0xfa   :  { %v116_v18 = vmax.f32 %v95_v11, %v111_v16  ;;  %v106_v19 = vmax.f32 %v94_v10, %v101_v17 }
  0xfc   :  { %v118_v20 = vmax.f32 %v106_v19, %v116_v18 }
  0xfe   :  { %v121_v21 = vsel %vm120_vm2, %v118_v20, 0.0 }
  0xff   :  { %122 = vadd.xlane.f32.xlu2 %v121_v21 }
 0x101   :  { %v113_v22 = vpop.permute.xlu1 %112  ;;  %v103_v23 = vpop.permute.xlu0 %102 }
 0x102   :  { %v117_v24 = vmax.f32 %v97_v15, %v113_v22  ;;  %v107_v25 = vmax.f32 %v96_v14, %v103_v23  ;;  %v286_v22 = vld [vmem:[%s1300_s3 + $0x78] sm:$0xff] }
 0x103   :  { %v302_v23 = vld [vmem:[%s1300_s3 + $0xf8] sm:$0xff]  ;;  %346 = vmatpush.msra.mxu2 %v286_v22 }
 0x104   :  { %v119_v26 = vmax.f32 %v107_v25, %v117_v24  ;;  %v318_v24 = vld [vmem:[%s1300_s3 + $0x178] sm:$0xff]  ;;  %366 = vmatpush.msra.mxu3 %v302_v23  ;;  %v442_v23 = vld [vmem:[%s1301_s4 + $0x1e0] sm:$0xff] }
 0x105   :  { %v334_v25 = vld [vmem:[%s1300_s3 + $0x1f8] sm:$0xff]  ;;  %386 = vmatpush.msrb.mxu0 %v318_v24  ;;  %v441_v24 = vld [vmem:[%s1301_s4 + $0x1c0] sm:$0xff] }
 0x106   :  { %v124_v27 = vsel %vm120_vm2, %v119_v26, 0.0  ;;  %406 = vmatpush.msrb.mxu1 %v334_v25  ;;  %v440_v25 = vld [vmem:[%s1301_s4 + $0x1a0] sm:$0xff] }
 0x107   :  { %125 = vadd.xlane.f32.xlu2 %v124_v27  ;;  %v301_v27 = vld [vmem:[%s1300_s3 + $0xf0] sm:$0xff] }
 0x108   :  { %367 = vmatpush.msra.mxu3 %v301_v27  ;;  %v438_v27 = vld [vmem:[%s1301_s4 + $0x160] sm:$0xff] }
 0x172   :  { %v123_v28 = vpop.xlane.xlu2 %122 }
 0x17a   :  { %v126_v29 = vpop.xlane.xlu2 %125 }
 0x17b   :  { %v127_v30 = vadd.f32 %v126_v29, %v123_v28  ;;  %v317_v28 = vld [vmem:[%s1300_s3 + $0x170] sm:$0xff] }
 0x17c   :  { %v333_v29 = vld [vmem:[%s1300_s3 + $0x1f0] sm:$0xff]  ;;  %387 = vmatpush.msrb.mxu0 %v317_v28  ;;  %v437_v28 = vld [vmem:[%s1301_s4 + $0x140] sm:$0xff] }
 0x17d   :  { %v128_v31 = vmul.f32 0.0078125, %v127_v30  ;;  %v284_v30 = vld [vmem:[%s1300_s3 + $0x68] sm:$0xff]  ;;  %407 = vmatpush.msrb.mxu1 %v333_v29  ;;  %v436_v29 = vld [vmem:[%s1301_s4 + $0x120] sm:$0xff] }
 0x17f   :  { %v129_v32 = vsub.f32 %v118_v20, %v128_v31  ;;  %v130_v33 = vsub.f32 %v119_v26, %v128_v31  ;;  %v285_v26 = vld [vmem:[%s1300_s3 + $0x70] sm:$0xff]  ;;  %v300_v31 = vld [vmem:[%s1300_s3 + $0xe8] sm:$0xff] }
 0x180   :  { %347 = vmatpush.msra.mxu2 %v285_v26  ;;  %368 = vmatpush.msra.mxu3 %v300_v31  ;;  %v439_v26 = vld [vmem:[%s1301_s4 + $0x180] sm:$0xff] }
 0x181   :  { %v135_v34 = vmul.f32 %v130_v33, %v130_v33  ;;  %v131_v35 = vmul.f32 %v129_v32, %v129_v32 }
 0x182   :  { %348 = vmatpush.msra.mxu2 %v284_v30 }
 0x183   :  { %v136_v36 = vsel %vm120_vm2, %v135_v34, 0.0  ;;  %v132_v37 = vsel %vm120_vm2, %v131_v35, 0.0  ;;  %v283_v34 = vld [vmem:[%s1300_s3 + $0x60] sm:$0xff] }
 0x184   :  { %137 = vadd.xlane.f32.xlu1 %v136_v36  ;;  %133 = vadd.xlane.f32.xlu0 %v132_v37  ;;  %v299_v35 = vld [vmem:[%s1300_s3 + $0xe0] sm:$0xff] }
 0x185   :  { %v315_v36 = vld [vmem:[%s1300_s3 + $0x160] sm:$0xff]  ;;  %349 = vmatpush.msra.mxu2 %v283_v34  ;;  %369 = vmatpush.msra.mxu3 %v299_v35 }
 0x186   :  { %v331_v37 = vld [vmem:[%s1300_s3 + $0x1e0] sm:$0xff] }
 0x187   :  { %350 = vmatpush.msra.mxu2 %v282_v38  ;;  %v433_v38 = vld [vmem:[%s1301_s4 + $0xc0] sm:$0xff] }
 0x1f7   :  { %v138_v40 = vpop.xlane.xlu1 %137  ;;  %v134_v41 = vpop.xlane.xlu0 %133 }
 0x1f8   :  { %v139_v42 = vadd.f32 %v138_v40, %v134_v41  ;;  %v314_v40 = vld [vmem:[%s1300_s3 + $0x158] sm:$0xff] }
 0x1f9   :  { %v330_v41 = vld [vmem:[%s1300_s3 + $0x1d8] sm:$0xff] }
 0x1fa   :  { %v140_v43 = vmul.f32 0.0078125, %v139_v42  ;;  %v281_v42 = vld [vmem:[%s1300_s3 + $0x50] sm:$0xff] }
 0x1fb   :  { %351 = vmatpush.msra.mxu2 %v281_v42  ;;  %v429_v42 = vld [vmem:[%s1301_s4 + $0x40] sm:$0xff] }
 0x1fc   :  { %v141_v44 = vadd.f32 1e-05, %v140_v43  ;;  %v297_v43 = vld [vmem:[%s1300_s3 + $0xd0] sm:$0xff] }
 0x1fe   :  { %692 = vrsqrt.f32 %v141_v44  ;;  %vm148_vm4 = vweird.f32 %v141_v44 }
 0x204   :  { %v693_v45 = vpop.eup %692 }
 0x205   :  { %v143_v46 = vmul.f32 %v693_v45, %v141_v44  ;;  %vm149_vm3 = vweird.f32 %v693_v45  ;;  %v313_v44 = vld [vmem:[%s1300_s3 + $0x150] sm:$0xff] }
 0x206   :  { %vm150_vm5 = vmor %vm148_vm4, %vm149_vm3 }
 0x207   :  { %v144_v47 = vmul.f32 %v693_v45, %v143_v46  ;;  %v280_v46 = vld [vmem:[%s1300_s3 + $0x48] sm:$0xff] }
 0x208   :  { %352 = vmatpush.msra.mxu2 %v280_v46  ;;  %v479_v46 = vld [vmem:[%s1301_s4 + $0x1c8] sm:$0xff] }
 0x209   :  { %v145_v48 = vmul.f32 0.5, %v144_v47  ;;  %v296_v47 = vld [vmem:[%s1300_s3 + $0xc8] sm:$0xff] }
 0x20b   :  { %v146_v49 = vsub.f32 1.5, %v145_v48  ;;  %v312_v48 = vld [vmem:[%s1300_s3 + $0x148] sm:$0xff] }
 0x20d   :  { %v147_v50 = vmul.f32 %v693_v45, %v146_v49  ;;  %v328_v49 = vld [vmem:[%s1300_s3 + $0x1c8] sm:$0xff] }
 0x20f   :  { %v151_v52 = vsel %vm150_vm5, %v693_v45, %v147_v50  ;;  %v329_v45 = vld [vmem:[%s1300_s3 + $0x1d0] sm:$0xff]  ;;  %v279_v50 = vld [vmem:[%s1300_s3 + $0x40] sm:$0xff] }
 0x210   :  { %v153_v53 = vmul.f32 %v152_v51, %v151_v52  ;;  %v311_v52 = vld [vmem:[%s1300_s3 + $0x140] sm:$0xff]  ;;  %353 = vmatpush.msra.mxu2 %v279_v50  ;;  %v475_v50 = vld [vmem:[%s1301_s4 + $0x148] sm:$0xff] }
 0x212   :  { %156 = vperm.xlu2 %689, %v153_v53   ;;  %v327_v53 = vld [vmem:[%s1300_s3 + $0x1c0] sm:$0xff] }
 0x21a   :  { %690 = vset.pattern.permute.xlu2 %v696_v39  ;;  %v298_v39 = vld [vmem:[%s1300_s3 + $0xd8] sm:$0xff] }
 0x21b   :  { %162 = vperm.xlu2 %690, %v152_v51   ;;  %370 = vmatpush.msra.mxu3 %v298_v39  ;;  %v295_v51 = vld [vmem:[%s1300_s3 + $0xc0] sm:$0xff] }
 0x21c   :  { %v432_v39 = vld [vmem:[%s1301_s4 + $0xa0] sm:$0xff] }
 0x21d   :  { %371 = vmatpush.msra.mxu3 %v297_v43  ;;  %v428_v43 = vld [vmem:[%s1301_s4 + $0x20] sm:$0xff] }
 0x21f   :  { %372 = vmatpush.msra.mxu3 %v296_v47  ;;  %v478_v47 = vld [vmem:[%s1301_s4 + $0x1a8] sm:$0xff] }
 0x221   :  { %373 = vmatpush.msra.mxu3 %v295_v51  ;;  %v474_v51 = vld [vmem:[%s1301_s4 + $0x128] sm:$0xff] }
 0x26c   :  { %v157_v54 = vpop.permute.xlu2 %156 }
 0x26d   :  { %v159_v55 = vmul.f32 %v157_v54, %v129_v32  ;;  %v166_v56 = vmul.f32 %v157_v54, %v130_v33  ;;  %v316_v32 = vld [vmem:[%s1300_s3 + $0x168] sm:$0xff]  ;;  %v278_v54 = vld [vmem:[%s1300_s3 + $0x38] sm:$0xff] }
 0x26e   :  { %v332_v33 = vld [vmem:[%s1300_s3 + $0x1e8] sm:$0xff]  ;;  %388 = vmatpush.msrb.mxu0 %v316_v32  ;;  %354 = vmatpush.msra.mxu2 %v278_v54 }
 0x26f   :  { %408 = vmatpush.msrb.mxu1 %v332_v33  ;;  %v471_v54 = vld [vmem:[%s1301_s4 + $0xc8] sm:$0xff] }
 0x270   :  { %389 = vmatpush.msrb.mxu0 %v315_v36  ;;  %v435_v36 = vld [vmem:[%s1301_s4 + $0x100] sm:$0xff] }
 0x271   :  { %409 = vmatpush.msrb.mxu1 %v331_v37  ;;  %v434_v37 = vld [vmem:[%s1301_s4 + $0xe0] sm:$0xff] }
 0x272   :  { %390 = vmatpush.msrb.mxu0 %v314_v40  ;;  %v431_v40 = vld [vmem:[%s1301_s4 + $0x80] sm:$0xff] }
 0x273   :  { %410 = vmatpush.msrb.mxu1 %v330_v41  ;;  %v430_v41 = vld [vmem:[%s1301_s4 + $0x60] sm:$0xff] }
 0x274   :  { %391 = vmatpush.msrb.mxu0 %v313_v44  ;;  %v427_v44 = vld [vmem:[%s1301_s4] sm:$0xff] }
 0x275   :  { %v163_v57 = vpop.permute.xlu2 %162  ;;  %411 = vmatpush.msrb.mxu1 %v329_v45  ;;  %v480_v45 = vld [vmem:[%s1301_s4 + $0x1e8] sm:$0xff] }
 0x276   :  { %v165_v58 = vadd.f32 %v163_v57, %v159_v55  ;;  %v167_v59 = vadd.f32 %v166_v56, %v163_v57  ;;  %392 = vmatpush.msrb.mxu0 %v312_v48  ;;  %v294_v55 = vld [vmem:[%s1300_s3 + $0xb8] sm:$0xff]  ;;  %v477_v48 = vld [vmem:[%s1301_s4 + $0x188] sm:$0xff] }
 0x277   :  { %412 = vmatpush.msrb.mxu1 %v328_v49  ;;  %v310_v56 = vld [vmem:[%s1300_s3 + $0x138] sm:$0xff]  ;;  %374 = vmatpush.msra.mxu3 %v294_v55  ;;  %v476_v49 = vld [vmem:[%s1301_s4 + $0x168] sm:$0xff] }
 0x278   :  { %186 = vst.sshfl [vmem:[#allocation1] sm:$0xff pattern:$0x73625140] %v165_v58  ;;  %v677_v60 = vrot.slane %v165_v58, 9  ;;  %v678_v62 = vrot.slane %v167_v59, 9  ;;  %393 = vmatpush.msrb.mxu0 %v311_v52  ;;  %v326_v57 = vld [vmem:[%s1300_s3 + $0x1b8] sm:$0xff] }
 0x279   :  { %169 = vst.msk [vmem:[#allocation2] sm:$0x1] %vm168_vm6, %v165_v58  ;;  %413 = vmatpush.msrb.mxu1 %v327_v53  ;;  %v473_v52 = vld [vmem:[%s1301_s4 + $0x108] sm:$0xff] }
 0x27a   :  { %174 = vrot.lane.b32.xlu2 %v677_v60, %s694_s0  ;;  %170 = vst.msk [vmem:[#allocation2 + $0x1] sm:$0x1] %vm168_vm6, %v167_v59  ;;  %394 = vmatpush.msrb.mxu0 %v310_v56  ;;  %v309_v60 = vld [vmem:[%s1300_s3 + $0x130] sm:$0xff]  ;;  %v472_v53 = vld [vmem:[%s1301_s4 + $0xe8] sm:$0xff]  ;;  %v335_v56 = vld [vmem:[%s1302_s6] ss:$0 sm:$0xff] }
 0x27b   :  { %414 = vmatpush.msrb.mxu1 %v326_v57  ;;  %v470_v55 = vld [vmem:[%s1301_s4 + $0xa8] sm:$0xff] }
 0x27c   :  { %395 = vmatpush.msrb.mxu0 %v309_v60  ;;  %v469_v57 = vld [vmem:[%s1301_s4 + $0x88] sm:$0xff] }
 0x27d   :  { %v468_v60 = vld [vmem:[%s1301_s4 + $0x68] sm:$0xff] }
 0x27f   :  { %v188_v61 = vld [vmem:[#allocation1 + $0x1] ss:$4 sm:$0xff] }
 0x280   :  { %191 = vst.sshfl [vmem:[#allocation1] sm:$0xff pattern:$0x73625140] %v167_v59 }
 0x281   :  { %190 = vst.msk [vmem:[#allocation2 + $0x2] sm:$0x1] %vm168_vm6, %v188_v61  ;;  %v325_v61 = vld [vmem:[%s1300_s3 + $0x1b0] sm:$0xff] }
 0x282   :  { %182 = vrot.lane.b32.xlu2 %v678_v62, %s694_s0  ;;  %v276_v62 = vld [vmem:[%s1300_s3 + $0x28] sm:$0xff]  ;;  %415 = vmatpush.msrb.mxu1 %v325_v61 }
 0x287   :  { %v193_v63 = vld [vmem:[#allocation1 + $0x1] ss:$4 sm:$0xff] }
 0x288   :  { %196 = vst.sshfl [vmem:[#allocation1] sm:$0xff pattern:$0x73625140] %v165_v58 }
 0x289   :  { %195 = vst.msk [vmem:[#allocation2 + $0x3] sm:$0x1] %vm168_vm6, %v193_v63  ;;  %v292_v63 = vld [vmem:[%s1300_s3 + $0xa8] sm:$0xff] }
 0x28f   :  { %v198_v0 = vld [vmem:[#allocation1 + $0x1] ss:$4 sm:$0xff] }
 0x290   :  { %v679_v1 = vrot.slane %v198_v0, 9  ;;  %205 = vst.sshfl [vmem:[#allocation1] sm:$0xff pattern:$0x73625140] %v167_v59  ;;  %v308_v0 = vld [vmem:[%s1300_s3 + $0x128] sm:$0xff] }
 0x291   :  { %396 = vmatpush.msrb.mxu0 %v308_v0 }
 0x292   :  { %201 = vrot.lane.b32.xlu0 %v679_v1, %s694_s0  ;;  %v324_v1 = vld [vmem:[%s1300_s3 + $0x1a8] sm:$0xff] }
 0x293   :  { %416 = vmatpush.msrb.mxu1 %v324_v1 }
 0x297   :  { %v207_v2 = vld [vmem:[#allocation1 + $0x1] ss:$4 sm:$0xff] }
 0x298   :  { %v680_v3 = vrot.slane %v207_v2, 9  ;;  %214 = vst.sshfl [vmem:[#allocation1] sm:$0xff pattern:$0x73625140] %v165_v58  ;;  %v275_v2 = vld [vmem:[%s1300_s3 + $0x20] sm:$0xff] }
 0x29a   :  { %210 = vrot.lane.b32.xlu1 %v680_v3, %s694_s0  ;;  %v291_v3 = vld [vmem:[%s1300_s3 + $0xa0] sm:$0xff] }
 0x29f   :  { %v216_v4 = vld [vmem:[#allocation1 + $0x2] ss:$4 sm:$0xff] }
 0x2a0   :  { %219 = vst.sshfl [vmem:[#allocation1] sm:$0xff pattern:$0x73625140] %v167_v59 }
 0x2a1   :  { %218 = vst.msk [vmem:[#allocation2 + $0x4] sm:$0x1] %vm168_vm6, %v216_v4  ;;  %v307_v4 = vld [vmem:[%s1300_s3 + $0x120] sm:$0xff] }
 0x2a2   :  { %397 = vmatpush.msrb.mxu0 %v307_v4  ;;  %v467_v4 = vld [vmem:[%s1301_s4 + $0x48] sm:$0xff] }
 0x2a7   :  { %v221_v5 = vld [vmem:[#allocation1 + $0x2] ss:$4 sm:$0xff] }
 0x2a8   :  { %224 = vst.sshfl [vmem:[#allocation1] sm:$0xff pattern:$0x73625140] %v165_v58 }
 0x2a9   :  { %223 = vst.msk [vmem:[#allocation2 + $0x5] sm:$0x1] %vm168_vm6, %v221_v5  ;;  %v323_v5 = vld [vmem:[%s1300_s3 + $0x1a0] sm:$0xff] }
 0x2aa   :  { %417 = vmatpush.msrb.mxu1 %v323_v5  ;;  %v466_v5 = vld [vmem:[%s1301_s4 + $0x28] sm:$0xff] }
 0x2af   :  { %v226_v6 = vld [vmem:[#allocation1 + $0x2] ss:$4 sm:$0xff] }
 0x2b0   :  { %v681_v7 = vrot.slane %v226_v6, 9  ;;  %233 = vst.sshfl [vmem:[#allocation1] sm:$0xff pattern:$0x73625140] %v167_v59  ;;  %v274_v6 = vld [vmem:[%s1300_s3 + $0x18] sm:$0xff] }
 0x2b2   :  { %229 = vrot.lane.b32.xlu2 %v681_v7, %s694_s0  ;;  %v290_v7 = vld [vmem:[%s1300_s3 + $0x98] sm:$0xff] }
 0x2b7   :  { %v235_v8 = vld [vmem:[#allocation1 + $0x2] ss:$4 sm:$0xff] }
 0x2b8   :  { %v682_v9 = vrot.slane %v235_v8, 9  ;;  %242 = vst.sshfl [vmem:[#allocation1] sm:$0xff pattern:$0x73625140] %v165_v58  ;;  %v306_v8 = vld [vmem:[%s1300_s3 + $0x118] sm:$0xff] }
 0x2b9   :  { %398 = vmatpush.msrb.mxu0 %v306_v8  ;;  %v517_v8 = vld [vmem:[%s1301_s4 + $0x1d0] sm:$0xff] }
 0x2ba   :  { %238 = vrot.lane.b32.xlu2 %v682_v9, %s694_s0  ;;  %v322_v9 = vld [vmem:[%s1300_s3 + $0x198] sm:$0xff] }
 0x2bb   :  { %418 = vmatpush.msrb.mxu1 %v322_v9  ;;  %v516_v9 = vld [vmem:[%s1301_s4 + $0x1b0] sm:$0xff] }
 0x2bf   :  { %v244_v10 = vld [vmem:[#allocation1 + $0x3] ss:$4 sm:$0xff] }
 0x2c0   :  { %247 = vst.sshfl [vmem:[#allocation1] sm:$0xff pattern:$0x73625140] %v167_v59 }
 0x2c1   :  { %246 = vst.msk [vmem:[#allocation2 + $0x6] sm:$0x1] %vm168_vm6, %v244_v10  ;;  %v273_v10 = vld [vmem:[%s1300_s3 + $0x10] sm:$0xff] }
 0x2c7   :  { %v249_v11 = vld [vmem:[#allocation1 + $0x3] ss:$4 sm:$0xff] }
 0x2c8   :  { %252 = vst.sshfl [vmem:[#allocation1] sm:$0xff pattern:$0x73625140] %v165_v58  ;;  %v277_v58 = vld [vmem:[%s1300_s3 + $0x30] sm:$0xff] }
 0x2c9   :  { %251 = vst.msk [vmem:[#allocation2 + $0x7] sm:$0x1] %vm168_vm6, %v249_v11  ;;  %355 = vmatpush.msra.mxu2 %v277_v58  ;;  %v289_v11 = vld [vmem:[%s1300_s3 + $0x90] sm:$0xff] }
 0x2cb   :  { %356 = vmatpush.msra.mxu2 %v276_v62 }
 0x2cd   :  { %357 = vmatpush.msra.mxu2 %v275_v2 }
 0x2cf   :  { %v254_v12 = vld [vmem:[#allocation1 + $0x3] ss:$4 sm:$0xff]  ;;  %358 = vmatpush.msra.mxu2 %v274_v6 }
 0x2d0   :  { %v683_v13 = vrot.slane %v254_v12, 9  ;;  %261 = vst.sshfl [vmem:[#allocation1] sm:$0xff pattern:$0x73625140] %v167_v59  ;;  %v293_v59 = vld [vmem:[%s1300_s3 + $0xb0] sm:$0xff]  ;;  %v465_v6 = vld [vmem:[%s1301_s4 + $0x8] sm:$0xff] }
 0x2d1   :  { %375 = vmatpush.msra.mxu3 %v293_v59  ;;  %v305_v12 = vld [vmem:[%s1300_s3 + $0x110] sm:$0xff]  ;;  %359 = vmatpush.msra.mxu2 %v273_v10 }
 0x2d2   :  { %257 = vrot.lane.b32.xlu0 %v683_v13, %s694_s0  ;;  %v321_v13 = vld [vmem:[%s1300_s3 + $0x190] sm:$0xff]  ;;  %399 = vmatpush.msrb.mxu0 %v305_v12 }
 0x2d3   :  { %376 = vmatpush.msra.mxu3 %v292_v63  ;;  %419 = vmatpush.msrb.mxu1 %v321_v13  ;;  %v515_v10 = vld [vmem:[%s1301_s4 + $0x190] sm:$0xff] }
 0x2d4   :  { %v175_v14 = vpop.permute.xlu2 %174  ;;  %v513_v12 = vld [vmem:[%s1301_s4 + $0x150] sm:$0xff] }
 0x2d5   :  { %178 = vst.msk [vmem:[#allocation2] sm:$0x1] %vm177_vm7, %v175_v14  ;;  %377 = vmatpush.msra.mxu3 %v291_v3  ;;  %v272_v14 = vld [vmem:[%s1300_s3 + $0x8] sm:$0xff]  ;;  %v512_v13 = vld [vmem:[%s1301_s4 + $0x130] sm:$0xff] }
 0x2d6   :  { %360 = vmatpush.msra.mxu2 %v272_v14  ;;  %v511_v14 = vld [vmem:[%s1301_s4 + $0x110] sm:$0xff] }
 0x2d7   :  { %v263_v15 = vld [vmem:[#allocation1 + $0x3] ss:$4 sm:$0xff]  ;;  %378 = vmatpush.msra.mxu3 %v290_v7 }
 0x2d8   :  { %v684_v16 = vrot.slane %v263_v15, 9  ;;  %v288_v15 = vld [vmem:[%s1300_s3 + $0x88] sm:$0xff]  ;;  %v518_v7 = vld [vmem:[%s1301_s4 + $0x1f0] sm:$0xff] }
 0x2d9   :  { %379 = vmatpush.msra.mxu3 %v289_v11  ;;  %v514_v11 = vld [vmem:[%s1301_s4 + $0x170] sm:$0xff] }
 0x2da   :  { %266 = vrot.lane.b32.xlu2 %v684_v16, %s694_s0  ;;  %v304_v16 = vld [vmem:[%s1300_s3 + $0x108] sm:$0xff] }
 0x2db   :  { %380 = vmatpush.msra.mxu3 %v288_v15  ;;  %400 = vmatpush.msrb.mxu0 %v304_v16  ;;  %v510_v15 = vld [vmem:[%s1301_s4 + $0xf0] sm:$0xff] }
 0x2dc   :  { %v183_v17 = vpop.permute.xlu2 %182  ;;  %v509_v16 = vld [vmem:[%s1301_s4 + $0xd0] sm:$0xff] }
 0x2dd   :  { %185 = vst.msk [vmem:[#allocation2 + $0x1] sm:$0x1] %vm177_vm7, %v183_v17  ;;  %v320_v17 = vld [vmem:[%s1300_s3 + $0x188] sm:$0xff] }
 0x2de   :  { %420 = vmatpush.msrb.mxu1 %v320_v17  ;;  %v508_v17 = vld [vmem:[%s1301_s4 + $0xb0] sm:$0xff] }
 0x304   :  { %v202_v18 = vpop.permute.xlu0 %201 }
 0x305   :  { %204 = vst.msk [vmem:[#allocation2 + $0x2] sm:$0x1] %vm177_vm7, %v202_v18  ;;  %v271_v18 = vld [vmem:[%s1300_s3] sm:$0xff] }
 0x306   :  { %361 = vmatpush.msra.mxu2 %v271_v18  ;;  %v507_v18 = vld [vmem:[%s1301_s4 + $0x90] sm:$0xff] }
 0x308   :  { %444 = vmatpush.msrb.mxu2 %v442_v23 }
 0x30a   :  { %445 = vmatpush.msrb.mxu2 %v441_v24  ;;  %v505_v24 = vld [vmem:[%s1301_s4 + $0x50] sm:$0xff] }
 0x30c   :  { %v211_v19 = vpop.permute.xlu1 %210  ;;  %v230_v20 = vpop.permute.xlu2 %229  ;;  %446 = vmatpush.msrb.mxu2 %v440_v25  ;;  %v504_v25 = vld [vmem:[%s1301_s4 + $0x30] sm:$0xff] }
 0x30d   :  { %213 = vst.msk [vmem:[#allocation2 + $0x3] sm:$0x1] %vm177_vm7, %v211_v19  ;;  %v287_v19 = vld [vmem:[%s1300_s3 + $0x80] sm:$0xff] }
 0x30e   :  { %232 = vst.msk [vmem:[#allocation2 + $0x4] sm:$0x1] %vm177_vm7, %v230_v20  ;;  %v303_v20 = vld [vmem:[%s1300_s3 + $0x100] sm:$0xff]  ;;  %381 = vmatpush.msra.mxu3 %v287_v19  ;;  %447 = vmatpush.msrb.mxu2 %v439_v26  ;;  %v506_v19 = vld [vmem:[%s1301_s4 + $0x70] sm:$0xff] }
 0x30f   :  { %401 = vmatpush.msrb.mxu0 %v303_v20  ;;  %v443_v20 = vld [vmem:[%s1302_s6 + $0x1] ss:$0 sm:$0xff]  ;;  %v503_v26 = vld [vmem:[%s1301_s4 + $0x10] sm:$0xff] }
 0x310   :  { %448 = vmatpush.msrb.mxu2 %v438_v27  ;;  %482 = vmatpush.msrb.mxu3 %v480_v45  ;;  %v556_v27 = vld [vmem:[%s1301_s4 + $0x1f8] sm:$0xff] }
 0x311   :  { %520 = vmatpush.msra.mxu0 %v518_v7  ;;  %v542_v45 = vld [vmem:[%s1301_s4 + $0x38] sm:$0xff]  ;;  %v585_v7 = vld [vmem:[%s1303_s5 + $0x30] sm:$0xff] }
 0x312   :  { %449 = vmatpush.msrb.mxu2 %v437_v28  ;;  %483 = vmatpush.msrb.mxu3 %v479_v46  ;;  %v555_v28 = vld [vmem:[%s1301_s4 + $0x1d8] sm:$0xff] }
 0x313   :  { %521 = vmatpush.msra.mxu0 %v517_v8  ;;  %v541_v46 = vld [vmem:[%s1301_s4 + $0x18] sm:$0xff] }
 0x314   :  { %v239_v21 = vpop.permute.xlu2 %238  ;;  %450 = vmatpush.msrb.mxu2 %v436_v29  ;;  %484 = vmatpush.msrb.mxu3 %v478_v47  ;;  %v554_v29 = vld [vmem:[%s1301_s4 + $0x1b8] sm:$0xff]  ;;  %v609_v47 = vld [vmem:[%s1303_s5 + $0xf0] sm:$0xff] }
 0x315   :  { %241 = vst.msk [vmem:[#allocation2 + $0x5] sm:$0x1] %vm177_vm7, %v239_v21  ;;  %v319_v21 = vld [vmem:[%s1300_s3 + $0x180] sm:$0xff]  ;;  %522 = vmatpush.msra.mxu0 %v516_v9  ;;  %v586_v8 = vld [vmem:[%s1303_s5 + $0x38] sm:$0xff] }
 0x316   :  { %421 = vmatpush.msrb.mxu1 %v319_v21  ;;  %451 = vmatpush.msrb.mxu2 %v435_v36  ;;  %v547_v36 = vld [vmem:[%s1301_s4 + $0xd8] sm:$0xff]  ;;  %v519_v9 = vld [vmem:[%s1302_s6 + $0x3] ss:$0 sm:$0xff] }
 0x317   :  { %485 = vmatpush.msrb.mxu3 %v477_v48  ;;  %523 = vmatpush.msra.mxu0 %v515_v10  ;;  %v610_v48 = vld [vmem:[%s1303_s5 + $0xf8] sm:$0xff] }
 0x318   :  { %452 = vmatpush.msrb.mxu2 %v434_v37  ;;  %558 = vmatpush.msra.mxu1 %v556_v27  ;;  %v546_v37 = vld [vmem:[%s1301_s4 + $0xb8] sm:$0xff] }
 0x319   :  { %486 = vmatpush.msrb.mxu3 %v476_v49  ;;  %524 = vmatpush.msra.mxu0 %v514_v11  ;;  %v607_v49 = vld [vmem:[%s1303_s5 + $0xe0] sm:$0xff] }
 0x31a   :  { %453 = vmatpush.msrb.mxu2 %v433_v38  ;;  %559 = vmatpush.msra.mxu1 %v555_v28  ;;  %v545_v38 = vld [vmem:[%s1301_s4 + $0x98] sm:$0xff] }
 0x31b   :  { %487 = vmatpush.msrb.mxu3 %v475_v50  ;;  %525 = vmatpush.msra.mxu0 %v513_v12  ;;  %v608_v50 = vld [vmem:[%s1303_s5 + $0xe8] sm:$0xff] }
 0x31c   :  { %454 = vmatpush.msrb.mxu2 %v432_v39  ;;  %560 = vmatpush.msra.mxu1 %v554_v29  ;;  %v544_v39 = vld [vmem:[%s1301_s4 + $0x78] sm:$0xff] }
 0x31d   :  { %488 = vmatpush.msrb.mxu3 %v474_v51  ;;  %526 = vmatpush.msra.mxu0 %v512_v13  ;;  %v605_v51 = vld [vmem:[%s1303_s5 + $0xd0] sm:$0xff]  ;;  %v583_v13 = vld [vmem:[%s1303_s5 + $0x20] sm:$0xff] }
 0x31e   :  { %455 = vmatpush.msrb.mxu2 %v431_v40  ;;  %v481_v40 = vld [vmem:[%s1302_s6 + $0x2] ss:$0 sm:$0xff] }
 0x31f   :  { %489 = vmatpush.msrb.mxu3 %v473_v52  ;;  %527 = vmatpush.msra.mxu0 %v511_v14  ;;  %v606_v52 = vld [vmem:[%s1303_s5 + $0xd8] sm:$0xff]  ;;  %v584_v14 = vld [vmem:[%s1303_s5 + $0x28] sm:$0xff] }
 0x320   :  { %456 = vmatpush.msrb.mxu2 %v430_v41 }
 0x321   :  { %490 = vmatpush.msrb.mxu3 %v472_v53  ;;  %528 = vmatpush.msra.mxu0 %v510_v15  ;;  %v603_v53 = vld [vmem:[%s1303_s5 + $0xc0] sm:$0xff]  ;;  %v581_v15 = vld [vmem:[%s1303_s5 + $0x10] sm:$0xff] }
 0x322   :  { %457 = vmatpush.msrb.mxu2 %v429_v42 }
 0x323   :  { %491 = vmatpush.msrb.mxu3 %v471_v54  ;;  %529 = vmatpush.msra.mxu0 %v509_v16  ;;  %v604_v54 = vld [vmem:[%s1303_s5 + $0xc8] sm:$0xff]  ;;  %v582_v16 = vld [vmem:[%s1303_s5 + $0x18] sm:$0xff] }
 0x324   :  { %458 = vmatpush.msrb.mxu2 %v428_v43 }
 0x325   :  { %492 = vmatpush.msrb.mxu3 %v470_v55  ;;  %530 = vmatpush.msra.mxu0 %v508_v17  ;;  %v601_v55 = vld [vmem:[%s1303_s5 + $0xb0] sm:$0xff]  ;;  %v579_v17 = vld [vmem:[%s1303_s5] sm:$0xff] }
 0x326   :  { %459 = vmatpush.msrb.mxu2 %v427_v44  ;;  %v543_v44 = vld [vmem:[%s1301_s4 + $0x58] sm:$0xff] }
 0x327   :  { %493 = vmatpush.msrb.mxu3 %v469_v57  ;;  %531 = vmatpush.msra.mxu0 %v507_v18  ;;  %v599_v57 = vld [vmem:[%s1303_s5 + $0xa0] sm:$0xff]  ;;  %v580_v18 = vld [vmem:[%s1303_s5 + $0x8] sm:$0xff] }
 0x329   :  { %494 = vmatpush.msrb.mxu3 %v468_v60  ;;  %532 = vmatpush.msra.mxu0 %v506_v19  ;;  %v598_v60 = vld [vmem:[%s1303_s5 + $0x98] sm:$0xff]  ;;  %v557_v19 = vld [vmem:[%s1302_s6 + $0x4] ss:$0 sm:$0xff] }
 0x32b   :  { %495 = vmatpush.msrb.mxu3 %v467_v4  ;;  %533 = vmatpush.msra.mxu0 %v505_v24  ;;  %v590_v4 = vld [vmem:[%s1303_s5 + $0x58] sm:$0xff] }
 0x32d   :  { %496 = vmatpush.msrb.mxu3 %v466_v5  ;;  %534 = vmatpush.msra.mxu0 %v504_v25  ;;  %v587_v5 = vld [vmem:[%s1303_s5 + $0x40] sm:$0xff] }
 0x32f   :  { %497 = vmatpush.msrb.mxu3 %v465_v6  ;;  %535 = vmatpush.msra.mxu0 %v503_v26  ;;  %v588_v6 = vld [vmem:[%s1303_s5 + $0x48] sm:$0xff] }
 0x334   :  { %v267_v22 = vpop.permute.xlu2 %266 }
 0x335   :  { %269 = vst.msk [vmem:[#allocation2 + $0x7] sm:$0x1] %vm177_vm7, %v267_v22 }
 0x344   :  { %v258_v30 = vpop.permute.xlu0 %257 }
 0x345   :  { %260 = vst.msk [vmem:[#allocation2 + $0x6] sm:$0x1] %vm177_vm7, %v258_v30  ;;  %v553_v30 = vld [vmem:[%s1301_s4 + $0x198] sm:$0xff] }
 0x346   :  { %561 = vmatpush.msra.mxu1 %v553_v30 }
 0x34c   :  { %v270_v31 = vld [vmem:[#allocation2] sm:$0xff] }
 0x34d   :  { %337 = vst [vmem:[#allocation1] ss:$4 sm:$0xff] %v270_v31  ;;  %v552_v31 = vld [vmem:[%s1301_s4 + $0x178] sm:$0xff] }
 0x34e   :  { %562 = vmatpush.msra.mxu1 %v552_v31 }
 0x354   :  { %v338_v32 = vld.sshfl [vmem:[#allocation1] sm:$0xff pattern:$0x73625140]  ;;  %v339_v33 = vld.sshfl [vmem:[#allocation1 + $0x8] sm:$0xff pattern:$0x73625140] }
 0x355   :  { %362 = vmatmul.f32.vlgmr.msra.gmra.mxu2 %v338_v32  ;;  %382 = vmatmul.f32.vlgmr.msra.gmra.mxu3 %v339_v33  ;;  %v340_v34 = vld.sshfl [vmem:[#allocation1 + $0x10] sm:$0xff pattern:$0x73625140]  ;;  %v341_v35 = vld.sshfl [vmem:[#allocation1 + $0x18] sm:$0xff pattern:$0x73625140] }
 0x356   :  { %402 = vmatmul.f32.vlgmr.msrb.gmra.mxu0 %v340_v34  ;;  %422 = vmatmul.f32.vlgmr.msrb.gmra.mxu1 %v341_v35  ;;  %v551_v32 = vld [vmem:[%s1301_s4 + $0x158] sm:$0xff] }
 0x357   :  { %v550_v33 = vld [vmem:[%s1301_s4 + $0x138] sm:$0xff]  ;;  %563 = vmatpush.msra.mxu1 %v551_v32  ;;  %618 = vmatpush.msra.mxu2 %v609_v47 }
 0x358   :  { %v549_v34 = vld [vmem:[%s1301_s4 + $0x118] sm:$0xff]  ;;  %638 = vmatpush.msra.mxu3 %v610_v48 }
 0x359   :  { %564 = vmatpush.msra.mxu1 %v550_v33  ;;  %v548_v35 = vld [vmem:[%s1301_s4 + $0xf8] sm:$0xff]  ;;  %619 = vmatpush.msra.mxu2 %v607_v49 }
 0x35a   :  { %639 = vmatpush.msra.mxu3 %v608_v50 }
 0x35b   :  { %565 = vmatpush.msra.mxu1 %v549_v34  ;;  %620 = vmatpush.msra.mxu2 %v605_v51 }
 0x35c   :  { %640 = vmatpush.msra.mxu3 %v606_v52 }
 0x35d   :  { %566 = vmatpush.msra.mxu1 %v548_v35  ;;  %621 = vmatpush.msra.mxu2 %v603_v53 }
 0x35e   :  { %641 = vmatpush.msra.mxu3 %v604_v54 }
 0x35f   :  { %567 = vmatpush.msra.mxu1 %v547_v36  ;;  %622 = vmatpush.msra.mxu2 %v601_v55 }
 0x361   :  { %568 = vmatpush.msra.mxu1 %v546_v37  ;;  %623 = vmatpush.msra.mxu2 %v599_v57 }
 0x363   :  { %569 = vmatpush.msra.mxu1 %v545_v38 }
 0x365   :  { %570 = vmatpush.msra.mxu1 %v544_v39 }
 0x367   :  { %571 = vmatpush.msra.mxu1 %v543_v44 }
 0x369   :  { %572 = vmatpush.msra.mxu1 %v542_v45 }
 0x36b   :  { %573 = vmatpush.msra.mxu1 %v541_v46 }
 0x3d3   :  { %v403_v63 = vpop.f32.mrf.mxu0  ;;  %v423_v1 = vpop.f32.mrf.mxu1 }
 0x3d8   :  { %v363_v58 = vpop.f32.mrf.mxu2  ;;  %v383_v61 = vpop.f32.mrf.mxu3 }
 0x3d9   :  { %v364_v59 = vadd.f32 %v363_v58, %v335_v56  ;;  %v602_v56 = vld [vmem:[%s1303_s5 + $0xb8] sm:$0xff]  ;;  %v600_v58 = vld [vmem:[%s1303_s5 + $0xa8] sm:$0xff] }
 0x3da   :  { %642 = vmatpush.msra.mxu3 %v602_v56 }
 0x3db   :  { %v384_v62 = vadd.f32 %v383_v61, %v364_v59  ;;  %v597_v59 = vld [vmem:[%s1303_s5 + $0x90] sm:$0xff]  ;;  %v595_v61 = vld [vmem:[%s1303_s5 + $0x80] sm:$0xff] }
 0x3dc   :  { %643 = vmatpush.msra.mxu3 %v600_v58  ;;  %624 = vmatpush.msra.mxu2 %v597_v59 }
 0x3dd   :  { %v404_v0 = vadd.f32 %v403_v63, %v384_v62  ;;  %v596_v62 = vld [vmem:[%s1303_s5 + $0x88] sm:$0xff]  ;;  %v593_v63 = vld [vmem:[%s1303_s5 + $0x70] sm:$0xff] }
 0x3de   :  { %644 = vmatpush.msra.mxu3 %v598_v60  ;;  %625 = vmatpush.msra.mxu2 %v595_v61 }
 0x3df   :  { %v424_v2 = vadd.f32 %v423_v1, %v404_v0  ;;  %v594_v0 = vld [vmem:[%s1303_s5 + $0x78] sm:$0xff]  ;;  %v591_v1 = vld [vmem:[%s1303_s5 + $0x60] sm:$0xff] }
 0x3e0   :  { %645 = vmatpush.msra.mxu3 %v596_v62  ;;  %626 = vmatpush.msra.mxu2 %v593_v63 }
 0x3e1   :  { %v426_v3 = vmax.f32 %v424_v2, 0.0  ;;  %v592_v2 = vld [vmem:[%s1303_s5 + $0x68] sm:$0xff] }
 0x3e2   :  { %646 = vmatpush.msra.mxu3 %v594_v0  ;;  %627 = vmatpush.msra.mxu2 %v591_v1 }
 0x3e3   :  { %460 = vmatmul.f32.vlgmr.msrb.gmra.mxu2 %v426_v3  ;;  %v589_v3 = vld [vmem:[%s1303_s5 + $0x50] sm:$0xff] }
 0x3e4   :  { %647 = vmatpush.msra.mxu3 %v592_v2  ;;  %628 = vmatpush.msra.mxu2 %v589_v3 }
 0x3e6   :  { %648 = vmatpush.msra.mxu3 %v590_v4  ;;  %629 = vmatpush.msra.mxu2 %v587_v5 }
 0x3e8   :  { %649 = vmatpush.msra.mxu3 %v588_v6  ;;  %630 = vmatpush.msra.mxu2 %v585_v7 }
 0x3ea   :  { %650 = vmatpush.msra.mxu3 %v586_v8  ;;  %631 = vmatpush.msra.mxu2 %v583_v13 }
 0x3ec   :  { %651 = vmatpush.msra.mxu3 %v584_v14  ;;  %632 = vmatpush.msra.mxu2 %v581_v15 }
 0x3ee   :  { %652 = vmatpush.msra.mxu3 %v582_v16  ;;  %633 = vmatpush.msra.mxu2 %v579_v17 }
 0x3f0   :  { %653 = vmatpush.msra.mxu3 %v580_v18 }
 0x466   :  { %v461_v21 = vpop.f32.mrf.mxu2 }
 0x467   :  { %v462_v22 = vadd.f32 %v461_v21, %v443_v20 }
 0x469   :  { %v464_v23 = vmax.f32 %v462_v22, 0.0 }
 0x46b   :  { %498 = vmatmul.f32.vlgmr.msrb.gmra.mxu3 %v464_v23  ;;  %v685_v23 = vld [vmem:[%s1302_s6 + $0x5] ss:$8 sm:$0x3] }
 0x46c   :  { %v614_v24 = vperm.slane %v685_v23, 0  ;;  %v615_v25 = vperm.slane %v685_v23, 1 }
 0x4ee   :  { %v499_v41 = vpop.f32.mrf.mxu3 }
 0x4ef   :  { %v500_v42 = vadd.f32 %v499_v41, %v481_v40 }
 0x4f1   :  { %v502_v43 = vmax.f32 %v500_v42, 0.0 }
 0x4f3   :  { %536 = vmatmul.f32.vlgmr.msra.gmra.mxu0 %v502_v43 }
 0x570   :  { %v537_v10 = vpop.f32.mrf.mxu0 }
 0x571   :  { %v538_v11 = vadd.f32 %v537_v10, %v519_v9 }
 0x573   :  { %v540_v12 = vmax.f32 %v538_v11, 0.0 }
 0x575   :  { %574 = vmatmul.f32.vlgmr.msra.gmra.mxu1 %v540_v12 }
 0x5f2   :  { %v575_v20 = vpop.f32.mrf.mxu1 }
 0x5f3   :  { %v576_v21 = vadd.f32 %v575_v20, %v557_v19 }
 0x5f5   :  { %v578_v22 = vmax.f32 %v576_v21, 0.0 }
 0x5f7   :  { %634 = vmatmul.f32.vlgmr.msra.gmra.mxu2 %v578_v22  ;;  %654 = vmatmul.f32.vlgmr.msra.gmra.mxu3 %v578_v22 }
 0x67a   :  { %v635_v26 = vpop.f32.mrf.mxu2  ;;  %v655_v27 = vpop.f32.mrf.mxu3 }
 0x67b   :  { %v636_v28 = vadd.f32 %v635_v26, %v614_v24  ;;  %v656_v29 = vadd.f32 %v655_v27, %v615_v25 }
 0x67d   :  { %v659_v30 = vmax.f32 %v656_v29, 0.0  ;;  %v658_v31 = vmax.f32 %v636_v28, 0.0 }
 0x67f   :  { %v662_v32 = vrot.slane %v659_v30, 6 }
 0x681   :  { %v664_v33 = vsel %vm663_vm8, %v658_v31, %v662_v32 }
 0x682   :  { %666 = vst [vmem:[%s1304_s7] sm:$0xf] %v664_v33 }

</bundles_post_ra>
